<compile_context>
chip_gen: v7x
topology: tpu7x:2x2x1
jax: 0.10.0
libtpu: 0.0.40
codegen_flags: <defaults>
</compile_context>

<pallas_src>
import jax
import jax.numpy as jnp
from jax.experimental import pallas as pl
from jax.experimental.pallas import tpu as pltpu

DIN = 784
DOUT = 10
DOUT_PAD = 128  # lane-dense output width


def linear_sigmoid_kernel(x_ref, w_ref, b_ref, o_ref):
    # MXU matmul in bf16 with f32 accumulation.
    x_bf = x_ref[...].astype(jnp.bfloat16)
    z = jnp.dot(x_bf, w_ref[...], preferred_element_type=jnp.float32)
    z = z + b_ref[...]            # (1, 128) broadcasts over the batch tile
    # sigmoid(z) = 1 / (1 + exp(-z)); exp and the approximate reciprocal both
    # go to the EUP slot, keeping the VALU free.
    e = jnp.exp(-z)
    o_ref[...] = pl.reciprocal(1.0 + e, approx=True).astype(o_ref.dtype)


def sgd_logistic_forward(x, w, b, *, block_b=512):
    """x: (B, 784) f32, w: (784, 10) f32, b: (10,) f32 -> (B, 10) f32."""
    B, din = x.shape
    assert din == DIN and w.shape == (DIN, DOUT) and b.shape == (DOUT,)

    # Lane-dense, bf16 weight and f32 bias, padded to 128 output columns.
    w_p = jnp.zeros((DIN, DOUT_PAD), jnp.bfloat16).at[:, :DOUT].set(
        w.astype(jnp.bfloat16))
    b_p = jnp.zeros((1, DOUT_PAD), jnp.float32).at[:, :DOUT].set(
        b.astype(jnp.float32))

    # Batch tile: 512 rows for large batches (near HBM roofline, well inside
    # every generation's scoped VMEM), else the batch rounded up to 8.
    if B >= block_b:
        tb = block_b
    else:
        tb = max(8, ((B + 7) // 8) * 8)
    bp = pl.cdiv(B, tb) * tb
    x_p = x if bp == B else jnp.pad(x, ((0, bp - B), (0, 0)))

    grid = (bp // tb,)
    bytes_accessed = (bp * DIN * x_p.dtype.itemsize      # stream x
                      + DIN * DOUT_PAD * 2               # resident bf16 W
                      + bp * DOUT_PAD * 4)               # write out
    out = pl.pallas_call(
        linear_sigmoid_kernel,
        out_shape=jax.ShapeDtypeStruct((bp, DOUT_PAD), jnp.float32),
        grid=grid,
        in_specs=[
            pl.BlockSpec((tb, DIN), lambda i: (i, 0)),        # streamed x tile
            pl.BlockSpec((DIN, DOUT_PAD), lambda i: (0, 0)),  # resident W
            pl.BlockSpec((1, DOUT_PAD), lambda i: (0, 0)),    # resident bias
        ],
        out_specs=pl.BlockSpec((tb, DOUT_PAD), lambda i: (i, 0)),
        compiler_params=pltpu.CompilerParams(
            dimension_semantics=("parallel",),        # megacore-shard on v7x
            vmem_limit_bytes=32 * 1024 * 1024,        # explicit, safe on v5e/v6e/v7x
        ),
        cost_estimate=pl.CostEstimate(
            flops=2 * bp * DIN * DOUT_PAD,
            transcendentals=bp * DOUT_PAD,
            bytes_accessed=bytes_accessed,
        ),
    )(x_p, w_p, b_p)
    return out[:B, :DOUT]


if __name__ == "__main__":
    key = jax.random.PRNGKey(0)
    kx, kw, kb, kx2 = jax.random.split(key, 4)

    # PyTorch-Linear-style init: U(-1/sqrt(fan_in), 1/sqrt(fan_in)).
    bound = 1.0 / jnp.sqrt(jnp.float32(DIN))
    w = jax.random.uniform(kw, (DIN, DOUT), jnp.float32, -bound, bound)
    b = jax.random.uniform(kb, (DOUT,), jnp.float32, -bound, bound)

    # Small batch (single grid step).
    B = 8
    x = jax.random.normal(kx, (B, DIN), jnp.float32)
    out = jax.block_until_ready(sgd_logistic_forward(x, w, b))
    ref = jax.nn.sigmoid(x @ w + b)
    assert out.shape == (B, DOUT)
    assert jnp.allclose(out, ref, atol=2e-2, rtol=2e-2)  # bf16 MXU + approx recip

    # Larger, non-divisible batch to exercise the pipelined grid + padding path.
    B2 = 1030
    x2 = jax.random.normal(kx2, (B2, DIN), jnp.float32)
    out2 = jax.block_until_ready(sgd_logistic_forward(x2, w, b))
    ref2 = jax.nn.sigmoid(x2 @ w + b)
    assert out2.shape == (B2, DOUT)
    assert jnp.allclose(out2, ref2, atol=2e-2, rtol=2e-2)

    # TODO(synk): optimizer / loss / scheduler are training-time utilities, not
    # part of the forward pass, so they are not expressed as Pallas kernels.
    print("KERNEL_OK")
</pallas_src>

<mosaic_0001>
module attributes {stable_mosaic.version = 11 : i64} {
  func.func @linear_sigmoid_kernel(%arg0: i32, %arg1: memref<8x784xf32, #tpu.memory_space<vmem>>, %arg2: memref<784x128xbf16, #tpu.memory_space<vmem>>, %arg3: memref<1x128xf32, #tpu.memory_space<vmem>>, %arg4: memref<8x128xf32, #tpu.memory_space<vmem>>) attributes {dimension_semantics = [#tpu.dimension_semantics<parallel>], iteration_bounds = array<i64: 1>, scalar_prefetch = 0 : i64, scratch_operands = 0 : i64, tpu.core_type = #tpu.core_type<tc>, window_params = [{transform_indices = @transform_0, window_bounds = array<i64: 8, 784>}, {pipeline_mode = #tpu.pipeline_mode<synchronous>, transform_indices = @transform_1, window_bounds = array<i64: 784, 128>}, {pipeline_mode = #tpu.pipeline_mode<synchronous>, transform_indices = @transform_2, window_bounds = array<i64: 1, 128>}, {transform_indices = @transform_3, window_bounds = array<i64: 8, 128>}]} {
    %c0 = arith.constant 0 : index
    %c0_0 = arith.constant 0 : index
    %0 = vector.load %arg1[%c0, %c0_0] : memref<8x784xf32, #tpu.memory_space<vmem>>, vector<8x784xf32>
    %1 = arith.truncf %0 : vector<8x784xf32> to vector<8x784xbf16>
    %c0_1 = arith.constant 0 : index
    %c0_2 = arith.constant 0 : index
    %2 = vector.load %arg2[%c0_1, %c0_2] : memref<784x128xbf16, #tpu.memory_space<vmem>>, vector<784x128xbf16>
    %cst = arith.constant dense<0.000000e+00> : vector<8x128xf32>
    %3 = tpu.matmul %1, %2, %cst {dimension_numbers = #tpu.dot_dimension_numbers<[1], [0], [0], [1], [0, 0, 1, 1], [], []>} : vector<8x784xbf16>, vector<784x128xbf16>, vector<8x128xf32> -> vector<8x128xf32>
    %c0_3 = arith.constant 0 : index
    %c0_4 = arith.constant 0 : index
    %4 = vector.load %arg3[%c0_3, %c0_4] : memref<1x128xf32, #tpu.memory_space<vmem>>, vector<1x128xf32>
    %5 = vector.broadcast %4 : vector<1x128xf32> to vector<8x128xf32>
    %6 = arith.addf %3, %5 : vector<8x128xf32>
    %cst_5 = arith.constant 0.000000e+00 : f32
    %7 = vector.broadcast %cst_5 : f32 to vector<8x128xf32>
    %8 = arith.subf %7, %6 : vector<8x128xf32>
    %9 = math.exp %8 : vector<8x128xf32>
    %cst_6 = arith.constant 1.000000e+00 : f32
    %10 = vector.broadcast %cst_6 : f32 to vector<8x128xf32>
    %11 = arith.addf %10, %9 : vector<8x128xf32>
    %12 = tpu.reciprocal %11 {approx = true} : vector<8x128xf32> -> vector<8x128xf32>
    %c0_7 = arith.constant 0 : index
    %c0_8 = arith.constant 0 : index
    %13 = vector.load %arg4[%c0_7, %c0_8] : memref<8x128xf32, #tpu.memory_space<vmem>>, vector<8x128xf32>
    tpu.vector_store %arg4[%c0_7, %c0_8], %12 {strides = array<i32>} : memref<8x128xf32, #tpu.memory_space<vmem>>, vector<8x128xf32>,
    return
  }
  func.func @transform_0(%arg0: i32) -> (i32, i32) {
    %c0_i32 = arith.constant 0 : i32
    %c0_i32_0 = arith.constant 0 : i32
    return %arg0, %c0_i32 : i32, i32
  }
  func.func @transform_1(%arg0: i32) -> (i32, i32) {
    %c0_i32 = arith.constant 0 : i32
    %c0_i32_0 = arith.constant 0 : i32
    %c0_i32_1 = arith.constant 0 : i32
    return %c0_i32, %c0_i32_0 : i32, i32
  }
  func.func @transform_2(%arg0: i32) -> (i32, i32) {
    %c0_i32 = arith.constant 0 : i32
    %c0_i32_0 = arith.constant 0 : i32
    %c0_i32_1 = arith.constant 0 : i32
    return %c0_i32, %c0_i32_0 : i32, i32
  }
  func.func @transform_3(%arg0: i32) -> (i32, i32) {
    %c0_i32 = arith.constant 0 : i32
    %c0_i32_0 = arith.constant 0 : i32
    return %arg0, %c0_i32 : i32, i32
  }
}

</mosaic_0001>

<bundles_post_ra>
// kernel: tpu_custom_call.1
= control target key start
LH: loop header
LB: loop body
LE: loop exit
PB: predicated region body
PF: predicated region fallthrough
CT: control target
= control target key end

     0   :  { %8 = vsyncpa [#allocation3], 0  ;;  %s971_s0 = inlined_call_operand.hbm [shape: f32[8,784], index: 0, kind: input, shape index: {}]   ;;  %s972_s1 = inlined_call_operand.hbm [shape: bf16[784,128], index: 1, kind: input, shape index: {}]   ;;  %s973_s2 = inlined_call_operand.vmem [shape: f32[1,128], index: 2, kind: input, shape index: {}]   ;;  %s974_s3 = inlined_call_operand.hbm [shape: f32[8,128], index: 3, kind: output, shape index: {}]  }
   0x1   :  { %9 = vsyncpa [#allocation6], 0 }
   0x2   :  { %10 = vsyncpa [#allocation4], 0  ;;  %s898_s12 = smov [#allocation2]   ;;  %s899_s14 = smov [#allocation5]  }
   0x3   :  { %s17_s13 = sshll.u32 %s898_s12, 4  ;;  %s26_s15 = sshll.u32 %s899_s14, 4  ;;  %s18_s13 = int_to_ptr.vmem [resolvable:$true] %s17_s13  ;;  %s925_s15 = int_to_ptr.vmem [resolvable:$true] %s26_s15 }
   0x4   :  { %s826_s18 = scalar_lea.hbm %s971_s0, 896 }
   0x5   :  { %p827_p0 = scmp.ne.s32.totalorder %s971_s0, %s826_s18  ;;  %p830_p1 = scmp.lt.u32.totalorder %s826_s18, %s971_s0 }
   0x7   :  { %p832_p2 = pnand %p830_p1, %p827_p0 }
   0x9   :  { %835 = shalt.err (!%p832_p2)
}
   0xa   :  { %s836_s23 = scalar_lea.vmem %s18_s13, 896  ;;  %p841_p4 = scmp.lt.s32.totalorder %s18_s13, %s18_s13 }
   0xb   :  { %p837_p3 = scmp.ne.s32.totalorder %s18_s13, %s836_s23  ;;  %p842_p5 = scmp.lt.s32.totalorder %s836_s23, %s836_s23 }
   0xd   :  { %p843_p6 = por %p842_p5, %p841_p4 }
   0xf   :  { %p844_p7 = pnand %p843_p6, %p837_p3 }
  0x11   :  { %847 = shalt.err (!%p844_p7)
}
  0x12   :  { %20 = dma.hbm_to_vmem [thread:$0]  %s971_s0, 896, %s18_s13, [#allocation3]  }
  0x13   :  { %s848_s28 = scalar_lea.hbm %s972_s1, 6272 }
  0x14   :  { %p849_p8 = scmp.ne.s32.totalorder %s972_s1, %s848_s28  ;;  %p852_p9 = scmp.lt.u32.totalorder %s848_s28, %s972_s1 }
  0x16   :  { %p854_p10 = pnand %p852_p9, %p849_p8 }
  0x18   :  { %857 = shalt.err (!%p854_p10)
}
  0x19   :  { %s858_s6 = scalar_lea.vmem %s925_s15, 6272  ;;  %p863_p12 = scmp.lt.s32.totalorder %s925_s15, %s925_s15 }
  0x1a   :  { %p859_p11 = scmp.ne.s32.totalorder %s925_s15, %s858_s6  ;;  %p864_p13 = scmp.lt.s32.totalorder %s858_s6, %s858_s6 }
  0x1c   :  { %p865_p0 = por %p864_p13, %p863_p12 }
  0x1e   :  { %p866_p1 = pnand %p865_p0, %p859_p11 }
  0x20   :  { %869 = shalt.err (!%p866_p1)
}
  0x21   :  { %s900_s0 = smov 64   ;;  %s901_s7 = smov 4  }
  0x22   :  { %32 = dma.hbm_to_vmem [thread:$0]  %s972_s1, 6272, %s925_s15, [#allocation6], %s900_s0, %s900_s0, %s901_s7  }
  0x23   :  { %892 = dma.done.wait [#allocation3], 896  }
  0x24   :  { %893 = vsyncadd [#allocation3], 4294966400 }
  0x25   :  { %894 = dma.done.wait [#allocation6], 6272  }
  0x26   :  { %895 = vsyncadd [#allocation6], 4294961024  ;;  %v773_v0 = vld [vmem:[#allocation5 + $0x40] sm:$0xff]   ;;  %v777_v4 = vld [vmem:[#allocation5 + $0x48] sm:$0xff]   ;;  %v902_v44 = vmov 0.0   ;;  %vm903_vm0 = vmmov 0  }
  0x27   :  { %v774_v1 = vld [vmem:[#allocation5] sm:$0xff]   ;;  %692 = vmatprep.subr.bf16.mxu0 %v773_v0  ;;  %v778_v5 = vld [vmem:[#allocation5 + $0x8] sm:$0xff]   ;;  %v781_v8 = vld [vmem:[#allocation5 + $0x50] sm:$0xff]   ;;  %vm455_vm1 = vcmask 130048  }
  0x28   :  { %v775_v2 = vld [vmem:[#allocation5 + $0xc0] sm:$0xff]   ;;  %693 = vmatpush3.bf16.msra.mxu0 %v774_v1  ;;  %v779_v6 = vld [vmem:[#allocation5 + $0xc8] sm:$0xff]   ;;  %v782_v9 = vld [vmem:[#allocation5 + $0x10] sm:$0xff]  }
  0x29   :  { %v776_v3 = vld [vmem:[#allocation5 + $0x80] sm:$0xff]   ;;  %714 = vmatprep.subr.bf16.mxu1 %v775_v2  ;;  %694 = vmatprep.subr.bf16.mxu0 %v777_v4  ;;  %v780_v7 = vld [vmem:[#allocation5 + $0x88] sm:$0xff]   ;;  %v783_v10 = vld [vmem:[#allocation5 + $0xd0] sm:$0xff]  }
  0x2a   :  { %715 = vmatpush3.bf16.msra.mxu1 %v776_v3  ;;  %v784_v11 = vld [vmem:[#allocation5 + $0x90] sm:$0xff]   ;;  %v785_v12 = vld [vmem:[#allocation5 + $0x58] sm:$0xff]   ;;  %v789_v16 = vld [vmem:[#allocation5 + $0x60] sm:$0xff]  }
  0x2b   :  { %716 = vmatprep.subr.bf16.mxu1 %v779_v6  ;;  %v786_v13 = vld [vmem:[#allocation5 + $0x18] sm:$0xff]   ;;  %v790_v17 = vld [vmem:[#allocation5 + $0x20] sm:$0xff]   ;;  %v793_v20 = vld [vmem:[#allocation5 + $0x68] sm:$0xff]  }
  0x2c   :  { %695 = vmatpush3.bf16.msra.mxu0 %v778_v5  ;;  %v787_v14 = vld [vmem:[#allocation5 + $0xd8] sm:$0xff]   ;;  %v791_v18 = vld [vmem:[#allocation5 + $0xe0] sm:$0xff]   ;;  %v794_v21 = vld [vmem:[#allocation5 + $0x28] sm:$0xff]  }
  0x2d   :  { %696 = vmatprep.subr.bf16.mxu0 %v781_v8  ;;  %v788_v15 = vld [vmem:[#allocation5 + $0x98] sm:$0xff]   ;;  %v792_v19 = vld [vmem:[#allocation5 + $0xa0] sm:$0xff]   ;;  %v795_v22 = vld [vmem:[#allocation5 + $0xe8] sm:$0xff]  }
  0x2e   :  { %717 = vmatpush3.bf16.msra.mxu1 %v780_v7  ;;  %v796_v23 = vld [vmem:[#allocation5 + $0xa8] sm:$0xff]   ;;  %v797_v24 = vld [vmem:[#allocation5 + $0x70] sm:$0xff]   ;;  %v801_v28 = vld [vmem:[#allocation5 + $0x78] sm:$0xff]  }
  0x2f   :  { %718 = vmatprep.subr.bf16.mxu1 %v783_v10  ;;  %v798_v25 = vld [vmem:[#allocation5 + $0x30] sm:$0xff]   ;;  %v802_v29 = vld [vmem:[#allocation5 + $0x38] sm:$0xff]   ;;  %v42_v34 = vld [vmem:[#allocation2] sm:$0xff] }
  0x30   :  { %697 = vmatpush3.bf16.msra.mxu0 %v782_v9  ;;  %v799_v26 = vld [vmem:[#allocation5 + $0xf0] sm:$0xff]   ;;  %v803_v30 = vld [vmem:[#allocation5 + $0xf8] sm:$0xff]   ;;  %v49_v35 = vpack.c.bf16 %v42_v34, %v42_v34  ;;  %v805_v36 = vld [vmem:[#allocation5 + $0x140] sm:$0xff]  }
  0x31   :  { %698 = vmatprep.subr.bf16.mxu0 %v785_v12  ;;  %v800_v27 = vld [vmem:[#allocation5 + $0xb0] sm:$0xff]   ;;  %v804_v33 = vld [vmem:[#allocation5 + $0xb8] sm:$0xff]   ;;  %v45_v37 = vld [vmem:[#allocation2 + $0x18] sm:$0xff] }
  0x32   :  { %719 = vmatpush3.bf16.msra.mxu1 %v784_v11  ;;  %v43_v31 = vld [vmem:[#allocation2 + $0x8] sm:$0xff]  ;;  %v52_v38 = vpack.c.bf16 %v45_v37, %v45_v37  ;;  %v806_v39 = vld [vmem:[#allocation5 + $0x100] sm:$0xff]   ;;  %v44_v40 = vld [vmem:[#allocation2 + $0x10] sm:$0xff] }
  0x33   :  { %720 = vmatprep.subr.bf16.mxu1 %v787_v14  ;;  %v50_v32 = vpack.c.bf16 %v43_v31, %v43_v31  ;;  %v51_v41 = vpack.c.bf16 %v44_v40, %v44_v40  ;;  %v807_v42 = vld [vmem:[#allocation5 + $0x148] sm:$0xff]   ;;  %v809_v45 = vld [vmem:[#allocation5 + $0x150] sm:$0xff]   ;;  %v811_v47 = vld [vmem:[#allocation5 + $0x158] sm:$0xff]  }
  0x34   :  { %699 = vmatpush3.bf16.msra.mxu0 %v786_v13  ;;  %531 = vmatprep.mubr.bf16.mxu1 %v52_v38  ;;  %v808_v43 = vld [vmem:[#allocation5 + $0x108] sm:$0xff]   ;;  %v810_v46 = vld [vmem:[#allocation5 + $0x110] sm:$0xff]   ;;  %v812_v48 = vld [vmem:[#allocation5 + $0x118] sm:$0xff]  }
  0x35   :  { %700 = vmatprep.subr.bf16.mxu0 %v789_v16  ;;  %491 = vmatprep.mubr.bf16.mxu0 %v50_v32  ;;  %v813_v49 = vld [vmem:[#allocation5 + $0x160] sm:$0xff]   ;;  %v815_v51 = vld [vmem:[#allocation5 + $0x168] sm:$0xff]   ;;  %v47_v53 = vld [vmem:[#allocation2 + $0x28] sm:$0xff] }
  0x36   :  { %721 = vmatpush3.bf16.msra.mxu1 %v788_v15  ;;  %v814_v50 = vld [vmem:[#allocation5 + $0x120] sm:$0xff]   ;;  %v54_v54 = vpack.c.bf16 %v47_v53, %v47_v53  ;;  %v48_v55 = vld [vmem:[#allocation2 + $0x30] sm:$0xff]  ;;  %v816_v56 = vld [vmem:[#allocation5 + $0x128] sm:$0xff]  }
  0x37   :  { %722 = vmatprep.subr.bf16.mxu1 %v791_v18  ;;  %v821_v52 = vld [vmem:[#allocation5 + $0x180] sm:$0xff]   ;;  %v55_v57 = vpack.c.bf16 %v48_v55, %v48_v55  ;;  %v817_v58 = vld [vmem:[#allocation5 + $0x170] sm:$0xff]   ;;  %v819_v60 = vld [vmem:[#allocation5 + $0x178] sm:$0xff]  }
  0x38   :  { %701 = vmatpush3.bf16.msra.mxu0 %v790_v17  ;;  %v818_v59 = vld [vmem:[#allocation5 + $0x130] sm:$0xff]   ;;  %v820_v61 = vld [vmem:[#allocation5 + $0x138] sm:$0xff]   ;;  %v46_v62 = vld [vmem:[#allocation2 + $0x20] sm:$0xff] }
  0x39   :  { %702 = vmatprep.subr.bf16.mxu0 %v793_v20  ;;  %v53_v63 = vpack.c.bf16 %v46_v62, %v46_v62  ;;  %v641_v1 = vld [vmem:[%s973_s2] ss:$0 sm:$0xff]  ;;  %s904_s2 = smov [#allocation7]  }
  0x3a   :  { %723 = vmatpush3.bf16.msra.mxu1 %v792_v19  ;;  %s631_s11 = sshll.u32 %s904_s2, 4  ;;  %s632_s11 = int_to_ptr.vmem [resolvable:$true] %s631_s11 }
  0x3b   :  { %724 = vmatprep.subr.bf16.mxu1 %v795_v22  ;;  %s870_s12 = scalar_lea.vmem %s632_s11, 128  ;;  %p875_p3 = scmp.lt.s32.totalorder %s632_s11, %s632_s11 }
  0x3c   :  { %703 = vmatpush3.bf16.msra.mxu0 %v794_v21  ;;  %p871_p2 = scmp.ne.s32.totalorder %s632_s11, %s870_s12  ;;  %p876_p4 = scmp.lt.s32.totalorder %s870_s12, %s870_s12 }
  0x3d   :  { %704 = vmatprep.subr.bf16.mxu0 %v797_v24 }
  0x3e   :  { %725 = vmatpush3.bf16.msra.mxu1 %v796_v23  ;;  %p877_p5 = por %p876_p4, %p875_p3 }
  0x3f   :  { %726 = vmatprep.subr.bf16.mxu1 %v799_v26 }
  0x40   :  { %705 = vmatpush3.bf16.msra.mxu0 %v798_v25  ;;  %p878_p6 = pnand %p877_p5, %p871_p2 }
  0x41   :  { %706 = vmatprep.subr.bf16.mxu0 %v801_v28 }
  0x42   :  { %727 = vmatpush3.bf16.msra.mxu1 %v800_v27 }
  0x43   :  { %728 = vmatprep.subr.bf16.mxu1 %v803_v30 }
  0x44   :  { %707 = vmatpush3.bf16.msra.mxu0 %v802_v29 }
  0x45   :  { %736 = vmatprep.subr.bf16.mxu0 %v805_v36 }
  0x46   :  { %729 = vmatpush3.bf16.msra.mxu1 %v804_v33 }
  0x47   :  { %492 = vmatmul.mubr.bf16.vlgmr.msra.gmra.mrb[0].mxu0 %v49_v35  ;;  %760 = vmatprep.subr.bf16.mxu1 %v902_v44 }
  0x48   :  { %737 = vmatpush3.bf16.msra.mxu0 %v806_v39  ;;  %571 = vmatprep.mubr.bf16.mxu0 %v54_v54 }
  0x49   :  { %532 = vmatmul.mubr.bf16.vlgmr.msra.gmra.mrb[0].mxu1 %v51_v41  ;;  %738 = vmatprep.subr.bf16.mxu0 %v807_v42 }
  0x4a   :  { %762 = vmatprep.mubr.msk.bf16.mxu1 %vm903_vm0, %v902_v44  ;;  %761 = vmatpush3.bf16.msra.mxu1 %v821_v52 }
  0x4c   :  { %739 = vmatpush3.bf16.msra.mxu0 %v808_v43 }
  0x4d   :  { %740 = vmatprep.subr.bf16.mxu0 %v809_v45 }
  0x50   :  { %741 = vmatpush3.bf16.msra.mxu0 %v810_v46 }
  0x51   :  { %742 = vmatprep.subr.bf16.mxu0 %v811_v47  ;;  %763 = vmatmul.mubr.msk.bf16.vlgmr.msra.gmra.mrb[4].mxu1 %vm455_vm1, %v55_v57 }
  0x54   :  { %743 = vmatpush3.bf16.msra.mxu0 %v812_v48 }
  0x55   :  { %744 = vmatprep.subr.bf16.mxu0 %v813_v49 }
  0x58   :  { %745 = vmatpush3.bf16.msra.mxu0 %v814_v50 }
  0x59   :  { %746 = vmatprep.subr.bf16.mxu0 %v815_v51 }
  0x5c   :  { %747 = vmatpush3.bf16.msra.mxu0 %v816_v56 }
  0x5d   :  { %748 = vmatprep.subr.bf16.mxu0 %v817_v58 }
  0x60   :  { %749 = vmatpush3.bf16.msra.mxu0 %v818_v59 }
  0x61   :  { %750 = vmatprep.subr.bf16.mxu0 %v819_v60 }
  0x64   :  { %751 = vmatpush3.bf16.msra.mxu0 %v820_v61 }
  0x67   :  { %572 = vmatmul.mubr.bf16.vlgmr.msra.gmra.mrb[4].mxu0 %v53_v63 }
 0x11a   :  { %v708_v0 = vpop.f32.mrb[0].mxu0 }
 0x11b   :  { %v709_v2 = vpop.f32.mrb[1].mxu0 }
 0x11c   :  { %v710_v3 = vadd.f32 %v709_v2, %v708_v0  ;;  %v711_v4 = vpop.f32.mrb[2].mxu0  ;;  %v730_v5 = vpop.f32.mrb[0].mxu1 }
 0x11d   :  { %v712_v6 = vpop.f32.mrb[3].mxu0  ;;  %v731_v8 = vpop.f32.mrb[1].mxu1 }
 0x11e   :  { %v494_v7 = vadd.f32 %v710_v3, %v641_v1  ;;  %v732_v9 = vadd.f32 %v731_v8, %v730_v5  ;;  %v733_v10 = vpop.f32.mrb[2].mxu1 }
 0x11f   :  { %v734_v11 = vpop.f32.mrb[3].mxu1 }
 0x120   :  { %v534_v12 = vadd.f32 %v732_v9, %v494_v7 }
 0x124   :  { %v613_v13 = vpop.f32.mrb[4].mxu1 }
 0x125   :  { %v764_v14 = vpop.f32.mrb[5].mxu1 }
 0x126   :  { %v616_v15 = vpop.f32.mrb[6].mxu1 }
 0x127   :  { %v765_v16 = vpop.f32.mrb[7].mxu1 }
 0x13a   :  { %v752_v17 = vpop.f32.mrb[4].mxu0 }
 0x13b   :  { %v753_v18 = vpop.f32.mrb[5].mxu0 }
 0x13c   :  { %v754_v19 = vadd.f32 %v753_v18, %v752_v17  ;;  %v755_v20 = vpop.f32.mrb[6].mxu0 }
 0x13d   :  { %v756_v21 = vpop.f32.mrb[7].mxu0 }
 0x13e   :  { %v574_v22 = vadd.f32 %v754_v19, %v534_v12 }
 0x140   :  { %v614_v23 = vadd.f32 %v613_v13, %v574_v22 }
 0x142   :  { %v619_v24 = vsub.f32 0.0, %v614_v23 }
 0x144   :  { %v620_v25 = vmul.f32 1.442695, %v619_v24 }
 0x146   :  { %822 = vpow2.f32 %v620_v25 }
 0x150   :  { %v823_v26 = vpop.eup %822 }
 0x151   :  { %v622_v27 = vadd.f32 1.0, %v823_v26 }
 0x153   :  { %824 = vrcp.f32 %v622_v27 }
 0x15d   :  { %v825_v28 = vpop.eup %824 }
 0x15e   :  { %624 = vst [vmem:[#allocation7] sm:$0xff] %v825_v28 }
 0x15f   :  { %881 = shalt.err (!%p878_p6)
}
 0x160   :  { %s882_s15 = scalar_lea.hbm %s974_s3, 128 }
 0x161   :  { %p883_p7 = scmp.ne.s32.totalorder %s974_s3, %s882_s15  ;;  %p886_p8 = scmp.lt.u32.totalorder %s882_s15, %s974_s3 }
 0x163   :  { %p888_p9 = pnand %p886_p8, %p883_p7 }
 0x165   :  { %891 = shalt.err (!%p888_p9)
}
 0x166   :  { %634 = dma.vmem_to_hbm [thread:$0]  %s632_s11, 128, %s974_s3, [#allocation4]  }
 0x167   :  { %896 = dma.done.wait [#allocation4], 128  }
 0x168   :  { %897 = vsyncadd [#allocation4], 4294967168 }
 0x169   :  { %638 = vsyncpa [#allocation3], 1 }
 0x16a   :  { %639 = vsyncpa [#allocation6], 1 }
 0x16b   :  { %640 = vsyncpa [#allocation4], 1 }

</bundles_post_ra>
